<compile_context>
chip_gen: v7x
topology: tpu7x:2x2x1
jax: 0.10.0
libtpu: 0.0.40
codegen_flags: <defaults>
</compile_context>

<pallas_src>
import functools

import jax
import jax.numpy as jnp
from jax import lax
from jax.experimental import pallas as pl
from jax.experimental.pallas import tpu as pltpu

LANES = 128
SUBLANES = 8
MAX_TILE_ROWS = 2048   # 2048 x 128 x 4 B = 1 MiB (f32) per input block


def _cdiv(a, b):
    return -(-a // b)


def _iou_partial_kernel(o_ref, t_ref, acc_ref, *, tile_rows, tiles_per_part,
                        total_rows, needs_mask):
    """Accumulate per-part partial sums.

    acc_ref block: (1, 2, 8, 128) f32, resident across the reduction axis
    (grid axis 1).  acc[0, 0] accumulates sum(o * t), acc[0, 1] accumulates
    sum(o + t), each kept as an (8, 128) vector so the hot loop stays on the
    VPU; no per-step scalar/XLU reduce.
    """
    p = pl.program_id(0)
    i = pl.program_id(1)

    @pl.when(i == 0)
    def _init():
        acc_ref[...] = jnp.zeros_like(acc_ref)

    o = o_ref[...].astype(jnp.float32)
    t = t_ref[...].astype(jnp.float32)

    if needs_mask:
        # rows past `total_rows` come from block padding / clamped duplicate
        # blocks -> zero them (jnp.where is safe even if the padding is garbage)
        g_start = (p * tiles_per_part + i) * tile_rows
        row_ids = g_start + lax.broadcasted_iota(jnp.int32, o.shape, 0)
        valid = row_ids < total_rows
        zero = jnp.float32(0.0)
        o = jnp.where(valid, o, zero)
        t = jnp.where(valid, t, zero)

    # Reduce only across sublane-groups (axis 0 after a major-dim reshape):
    # vreg-wise VPU adds, layout-preserving.
    o3 = o.reshape(tile_rows // SUBLANES, SUBLANES, LANES)
    t3 = t.reshape(tile_rows // SUBLANES, SUBLANES, LANES)
    acc_ref[0, 0] += jnp.sum(o3 * t3, axis=0)
    acc_ref[0, 1] += jnp.sum(o3 + t3, axis=0)


def iou_metric(outputs: jax.Array, targets: jax.Array, smooth: float = 1e-6) -> jax.Array:
    """J(A,B) = |A∩B| / (|A| + |B| - |A∩B|), matching PyTorch IoUMetric.forward."""
    o = jnp.ravel(outputs)          # no astype here: cast per-tile in the kernel
    t = jnp.ravel(targets)
    n = o.shape[0]

    in_bytes = o.size * o.dtype.itemsize + t.size * t.dtype.itemsize

    # Minimal tail pad (original dtype) so the slab is [rows, 128] with rows % 8 == 0.
    chunk = SUBLANES * LANES
    n_pad = _cdiv(n, chunk) * chunk
    if n_pad != n:
        o = jnp.pad(o, (0, n_pad - n))
        t = jnp.pad(t, (0, n_pad - n))
    rows = n_pad // LANES
    o2 = o.reshape(rows, LANES)
    t2 = t.reshape(rows, LANES)

    # Block size: as large as possible (up to 1 MiB f32 per input) to amortize
    # per-grid-step overhead; tiny inputs use one full-extent block.
    tile_rows = rows if rows <= MAX_TILE_ROWS else MAX_TILE_ROWS
    total_tiles = _cdiv(rows, tile_rows)

    # Split the row-tiles across 2 "parallel" parts (v7x megacore); 1 if tiny.
    num_parts = 2 if total_tiles >= 2 else 1
    tiles_per_part = _cdiv(total_tiles, num_parts)
    covered_rows = num_parts * tiles_per_part * tile_rows
    needs_mask = covered_rows > rows

    last_tile = total_tiles - 1
    if num_parts * tiles_per_part > total_tiles:
        def in_map(pp, ii):
            # keep the DMA in-bounds; over-covered blocks are masked in-kernel
            return (jnp.minimum(pp * tiles_per_part + ii, last_tile), 0)
    else:
        def in_map(pp, ii):
            return (pp * tiles_per_part + ii, 0)

    kernel = functools.partial(
        _iou_partial_kernel,
        tile_rows=tile_rows,
        tiles_per_part=tiles_per_part,
        total_rows=rows,
        needs_mask=needs_mask,
    )

    partials = pl.pallas_call(
        kernel,
        out_shape=jax.ShapeDtypeStruct((num_parts, 2, SUBLANES, LANES), jnp.float32),
        grid_spec=pltpu.PrefetchScalarGridSpec(
            num_scalar_prefetch=0,
            grid=(num_parts, tiles_per_part),
            in_specs=[
                pl.BlockSpec((tile_rows, LANES), in_map),
                pl.BlockSpec((tile_rows, LANES), in_map),
            ],
            out_specs=pl.BlockSpec((1, 2, SUBLANES, LANES),
                                   lambda pp, ii: (pp, 0, 0, 0)),
        ),
        compiler_params=pltpu.CompilerParams(
            dimension_semantics=("parallel", "arbitrary"),
        ),
        cost_estimate=pl.CostEstimate(
            flops=4 * n,
            transcendentals=0,
            bytes_accessed=in_bytes + num_parts * 2 * SUBLANES * LANES * 4,
        ),
    )(o2, t2)

    # Tiny finalize: cross-part combine, full reduce, smooth ratio.
    intersection = jnp.sum(partials[:, 0])
    total = jnp.sum(partials[:, 1])
    union = total - intersection
    smooth = jnp.float32(smooth)
    return (intersection + smooth) / (union + smooth)


def _iou_ref(outputs, targets, smooth=1e-6):
    o = jnp.ravel(outputs).astype(jnp.float32)
    t = jnp.ravel(targets).astype(jnp.float32)
    inter = jnp.sum(o * t)
    total = jnp.sum(o + t)
    union = total - inter
    return (inter + smooth) / (union + smooth)


if __name__ == "__main__":
    key = jax.random.PRNGKey(0)
    k1, k2, k3, k4 = jax.random.split(key, 4)

    # small canonical shapes: NCHW predicted probs / binary labels
    outputs = jax.random.uniform(k1, (2, 1, 16, 16), dtype=jnp.float32)
    targets = (jax.random.uniform(k2, (2, 1, 16, 16)) > 0.5).astype(jnp.float32)
    iou = iou_metric(outputs, targets)
    jax.block_until_ready(iou)
    ref = _iou_ref(outputs, targets)
    assert jnp.allclose(iou, ref, rtol=1e-5, atol=1e-6), (iou, ref)

    # larger ragged shape: exercises the multi-tile, two-part, masked/clamped path
    outputs2 = jax.random.uniform(k3, (2, 1, 512, 520), dtype=jnp.float32)
    targets2 = (jax.random.uniform(k4, (2, 1, 512, 520)) > 0.5).astype(jnp.float32)
    iou2 = iou_metric(outputs2, targets2)
    jax.block_until_ready(iou2)
    ref2 = _iou_ref(outputs2, targets2)
    assert jnp.allclose(iou2, ref2, rtol=1e-4, atol=1e-5), (iou2, ref2)

    print("KERNEL_OK")
</pallas_src>

<mosaic_0001>
module attributes {stable_mosaic.version = 11 : i64} {
  func.func @_iou_partial_kernel(%arg0: i32, %arg1: i32, %arg2: memref<8x128xf32, #tpu.memory_space<vmem>>, %arg3: memref<8x128xf32, #tpu.memory_space<vmem>>, %arg4: memref<1x2x8x128xf32, #tpu.memory_space<vmem>>) attributes {dimension_semantics = [#tpu.dimension_semantics<parallel>, #tpu.dimension_semantics<arbitrary>], iteration_bounds = array<i64: 1, 1>, scalar_prefetch = 0 : i64, scratch_operands = 0 : i64, tpu.core_type = #tpu.core_type<tc>, window_params = [{transform_indices = @transform_0, window_bounds = array<i64: 8, 128>}, {transform_indices = @transform_1, window_bounds = array<i64: 8, 128>}, {transform_indices = @transform_2, window_bounds = array<i64: 1, 2, 8, 128>}]} {
    %c0_i32 = arith.constant 0 : i32
    %0 = arith.cmpi eq, %arg1, %c0_i32 : i32
    %1 = arith.extui %0 : i1 to i32
    %c0_i32_0 = arith.constant 0 : i32
    %2 = arith.cmpi ne, %1, %c0_i32_0 : i32
    scf.if %2 {
      %cst_20 = arith.constant 0.000000e+00 : f32
      %23 = vector.broadcast %cst_20 : f32 to vector<1x2x8x128xf32>
      %c0_21 = arith.constant 0 : index
      %c0_22 = arith.constant 0 : index
      %c0_23 = arith.constant 0 : index
      %c0_24 = arith.constant 0 : index
      %24 = vector.load %arg4[%c0_21, %c0_22, %c0_23, %c0_24] : memref<1x2x8x128xf32, #tpu.memory_space<vmem>>, vector<1x2x8x128xf32>
      tpu.vector_store %arg4[%c0_21, %c0_22, %c0_23, %c0_24], %23 {strides = array<i32>} : memref<1x2x8x128xf32, #tpu.memory_space<vmem>>, vector<1x2x8x128xf32>,
    } else {
    }
    %c0 = arith.constant 0 : index
    %c0_1 = arith.constant 0 : index
    %3 = vector.load %arg2[%c0, %c0_1] : memref<8x128xf32, #tpu.memory_space<vmem>>, vector<8x128xf32>
    %c0_2 = arith.constant 0 : index
    %c0_3 = arith.constant 0 : index
    %4 = vector.load %arg3[%c0_2, %c0_3] : memref<8x128xf32, #tpu.memory_space<vmem>>, vector<8x128xf32>
    %5 = vector.shape_cast %3 : vector<8x128xf32> to vector<1x8x128xf32>
    %6 = vector.shape_cast %4 : vector<8x128xf32> to vector<1x8x128xf32>
    %c0_4 = arith.constant 0 : index
    %c0_5 = arith.constant 0 : index
    %c0_6 = arith.constant 0 : index
    %c0_7 = arith.constant 0 : index
    %7 = vector.load %arg4[%c0_4, %c0_5, %c0_6, %c0_7] : memref<1x2x8x128xf32, #tpu.memory_space<vmem>>, vector<1x1x8x128xf32>
    %8 = vector.shape_cast %7 : vector<1x1x8x128xf32> to vector<8x128xf32>
    %9 = arith.mulf %5, %6 : vector<1x8x128xf32>
    %cst = arith.constant dense<0.000000e+00> : vector<8x128xf32>
    %10 = vector.multi_reduction <add>, %9, %cst [0] : vector<1x8x128xf32> to vector<8x128xf32>
    %11 = arith.addf %8, %10 : vector<8x128xf32>
    %c0_8 = arith.constant 0 : index
    %c0_9 = arith.constant 0 : index
    %c0_10 = arith.constant 0 : index
    %c0_11 = arith.constant 0 : index
    %12 = vector.load %arg4[%c0_8, %c0_9, %c0_10, %c0_11] : memref<1x2x8x128xf32, #tpu.memory_space<vmem>>, vector<1x1x8x128xf32>
    %13 = vector.shape_cast %12 : vector<1x1x8x128xf32> to vector<8x128xf32>
    %14 = vector.shape_cast %11 : vector<8x128xf32> to vector<1x1x8x128xf32>
    tpu.vector_store %arg4[%c0_8, %c0_9, %c0_10, %c0_11], %14 {strides = array<i32>} : memref<1x2x8x128xf32, #tpu.memory_space<vmem>>, vector<1x1x8x128xf32>,
    %c0_12 = arith.constant 0 : index
    %c1 = arith.constant 1 : index
    %c0_13 = arith.constant 0 : index
    %c0_14 = arith.constant 0 : index
    %15 = vector.load %arg4[%c0_12, %c1, %c0_13, %c0_14] : memref<1x2x8x128xf32, #tpu.memory_space<vmem>>, vector<1x1x8x128xf32>
    %16 = vector.shape_cast %15 : vector<1x1x8x128xf32> to vector<8x128xf32>
    %17 = arith.addf %5, %6 : vector<1x8x128xf32>
    %cst_15 = arith.constant dense<0.000000e+00> : vector<8x128xf32>
    %18 = vector.multi_reduction <add>, %17, %cst_15 [0] : vector<1x8x128xf32> to vector<8x128xf32>
    %19 = arith.addf %16, %18 : vector<8x128xf32>
    %c0_16 = arith.constant 0 : index
    %c1_17 = arith.constant 1 : index
    %c0_18 = arith.constant 0 : index
    %c0_19 = arith.constant 0 : index
    %20 = vector.load %arg4[%c0_16, %c1_17, %c0_18, %c0_19] : memref<1x2x8x128xf32, #tpu.memory_space<vmem>>, vector<1x1x8x128xf32>
    %21 = vector.shape_cast %20 : vector<1x1x8x128xf32> to vector<8x128xf32>
    %22 = vector.shape_cast %19 : vector<8x128xf32> to vector<1x1x8x128xf32>
    tpu.vector_store %arg4[%c0_16, %c1_17, %c0_18, %c0_19], %22 {strides = array<i32>} : memref<1x2x8x128xf32, #tpu.memory_space<vmem>>, vector<1x1x8x128xf32>,
    return
  }
  func.func @transform_0(%arg0: i32, %arg1: i32) -> (i32, i32) {
    %c1_i32 = arith.constant 1 : i32
    %0 = arith.muli %arg0, %c1_i32 : i32
    %1 = arith.addi %0, %arg1 : i32
    %c0_i32 = arith.constant 0 : i32
    %c0_i32_0 = arith.constant 0 : i32
    return %1, %c0_i32 : i32, i32
  }
  func.func @transform_1(%arg0: i32, %arg1: i32) -> (i32, i32) {
    %c1_i32 = arith.constant 1 : i32
    %0 = arith.muli %arg0, %c1_i32 : i32
    %1 = arith.addi %0, %arg1 : i32
    %c0_i32 = arith.constant 0 : i32
    %c0_i32_0 = arith.constant 0 : i32
    return %1, %c0_i32 : i32, i32
  }
  func.func @transform_2(%arg0: i32, %arg1: i32) -> (i32, i32, i32, i32) {
    %c0_i32 = arith.constant 0 : i32
    %c0_i32_0 = arith.constant 0 : i32
    %c0_i32_1 = arith.constant 0 : i32
    %c0_i32_2 = arith.constant 0 : i32
    return %arg0, %c0_i32, %c0_i32_0, %c0_i32_1 : i32, i32, i32, i32
  }
}

</mosaic_0001>

<bundles_post_ra>
// kernel: tpu_custom_call.1
= control target key start
LH: loop header
LB: loop body
LE: loop exit
PB: predicated region body
PF: predicated region fallthrough
CT: control target
= control target key end

     0   :  { %7 = vsyncpa [#allocation3], 0  ;;  %s215_s0 = inlined_call_operand.hbm [shape: f32[8,128], index: 0, kind: input, shape index: {}]   ;;  %s216_s1 = inlined_call_operand.hbm [shape: f32[8,128], index: 1, kind: input, shape index: {}]   ;;  %s217_s2 = inlined_call_operand.hbm [shape: f32[1,2,8,128], index: 2, kind: output, shape index: {}]  }
   0x1   :  { %8 = vsyncpa [#allocation6], 0 }
   0x2   :  { %9 = vsyncpa [#allocation4], 0  ;;  %s159_s9 = smov [#allocation2]   ;;  %s160_s11 = smov [#allocation5]  }
   0x3   :  { %s19_s10 = sshll.u32 %s159_s9, 4  ;;  %s32_s12 = sshll.u32 %s160_s11, 4  ;;  %s20_s10 = int_to_ptr.vmem [resolvable:$true] %s19_s10  ;;  %s33_s12 = int_to_ptr.vmem [resolvable:$true] %s32_s12 }
   0x4   :  { %s87_s15 = scalar_lea.hbm %s215_s0, 128 }
   0x5   :  { %p88_p0 = scmp.ne.s32.totalorder %s215_s0, %s87_s15  ;;  %p91_p1 = scmp.lt.u32.totalorder %s87_s15, %s215_s0 }
   0x7   :  { %p93_p2 = pnand %p91_p1, %p88_p0 }
   0x9   :  { %96 = shalt.err (!%p93_p2)
}
   0xa   :  { %s97_s20 = scalar_lea.vmem %s20_s10, 128  ;;  %p102_p4 = scmp.lt.s32.totalorder %s20_s10, %s20_s10 }
   0xb   :  { %p98_p3 = scmp.ne.s32.totalorder %s20_s10, %s97_s20  ;;  %p103_p5 = scmp.lt.s32.totalorder %s97_s20, %s97_s20 }
   0xd   :  { %p104_p6 = por %p103_p5, %p102_p4 }
   0xf   :  { %p105_p7 = pnand %p104_p6, %p98_p3 }
  0x11   :  { %108 = shalt.err (!%p105_p7)
}
  0x12   :  { %22 = dma.hbm_to_vmem [thread:$0]  %s215_s0, 128, %s20_s10, [#allocation3]  }
  0x13   :  { %s109_s25 = scalar_lea.hbm %s216_s1, 128 }
  0x14   :  { %p110_p8 = scmp.ne.s32.totalorder %s216_s1, %s109_s25  ;;  %p113_p9 = scmp.lt.u32.totalorder %s109_s25, %s216_s1 }
  0x16   :  { %p115_p10 = pnand %p113_p9, %p110_p8 }
  0x18   :  { %118 = shalt.err (!%p115_p10)
}
  0x19   :  { %s119_s30 = scalar_lea.vmem %s33_s12, 128  ;;  %p124_p12 = scmp.lt.s32.totalorder %s33_s12, %s33_s12 }
  0x1a   :  { %p120_p11 = scmp.ne.s32.totalorder %s33_s12, %s119_s30  ;;  %p125_p13 = scmp.lt.s32.totalorder %s119_s30, %s119_s30 }
  0x1c   :  { %p126_p0 = por %p125_p13, %p124_p12 }
  0x1e   :  { %p127_p1 = pnand %p126_p0, %p120_p11 }
  0x20   :  { %130 = shalt.err (!%p127_p1)
}
  0x21   :  { %35 = dma.hbm_to_vmem [thread:$0]  %s216_s1, 128, %s33_s12, [#allocation6]  }
  0x22   :  { %153 = dma.done.wait [#allocation3], 128  }
  0x23   :  { %154 = vsyncadd [#allocation3], 4294967168 }
  0x24   :  { %155 = dma.done.wait [#allocation6], 128  }
  0x25   :  { %156 = vsyncadd [#allocation6], 4294967168  ;;  %v50_v0 = vld [vmem:[#allocation2] sm:$0xff]  ;;  %v51_v1 = vld [vmem:[#allocation5] sm:$0xff]  ;;  %s161_s4 = smov [#allocation7]  }
  0x26   :  { %s68_s5 = sshll.u32 %s161_s4, 4  ;;  %v53_v2 = vmul.f32 %v51_v1, %v50_v0  ;;  %v59_v3 = vadd.f32 %v51_v1, %v50_v0  ;;  %s69_s5 = int_to_ptr.vmem [resolvable:$true] %s68_s5 }
  0x27   :  { %s131_s6 = scalar_lea.vmem %s69_s5, 256  ;;  %p136_p3 = scmp.lt.s32.totalorder %s69_s5, %s69_s5 }
  0x28   :  { %56 = vst [vmem:[#allocation7] sm:$0xff] %v53_v2  ;;  %62 = vst [vmem:[#allocation7 + $0x8] sm:$0xff] %v59_v3  ;;  %p132_p2 = scmp.ne.s32.totalorder %s69_s5, %s131_s6  ;;  %p137_p4 = scmp.lt.s32.totalorder %s131_s6, %s131_s6 }
  0x2a   :  { %p138_p5 = por %p137_p4, %p136_p3 }
  0x2c   :  { %p139_p6 = pnand %p138_p5, %p132_p2 }
  0x2e   :  { %142 = shalt.err (!%p139_p6)
}
  0x2f   :  { %s143_s8 = scalar_lea.hbm %s217_s2, 256 }
  0x30   :  { %p144_p7 = scmp.ne.s32.totalorder %s217_s2, %s143_s8  ;;  %p147_p8 = scmp.lt.u32.totalorder %s143_s8, %s217_s2 }
  0x32   :  { %p149_p9 = pnand %p147_p8, %p144_p7 }
  0x34   :  { %152 = shalt.err (!%p149_p9)
}
  0x35   :  { %s162_s13 = smov 128   ;;  %s163_s14 = smov 8  }
  0x36   :  { %74 = dma.vmem_to_hbm [thread:$0]  %s69_s5, 256, %s217_s2, [#allocation4], %s162_s13, %s162_s13, %s163_s14  }
  0x37   :  { %157 = dma.done.wait [#allocation4], 256  }
  0x38   :  { %158 = vsyncadd [#allocation4], 4294967040 }
  0x39   :  { %78 = vsyncpa [#allocation3], 1 }
  0x3a   :  { %79 = vsyncpa [#allocation6], 1 }
  0x3b   :  { %80 = vsyncpa [#allocation4], 1 }

</bundles_post_ra>
